<compile_context>
chip_gen: v7x
topology: tpu7x:2x2x1
jax: 0.10.0
libtpu: 0.0.40
codegen_flags: <defaults>
</compile_context>

<pallas_src>
import functools

import jax
import jax.numpy as jnp
from jax import lax
from jax.experimental import pallas as pl
from jax.experimental.pallas import tpu as pltpu

LANES = 128
SUBLANES = 8
MAX_BLOCK_ROWS = 8192    # 8192 * 128 * 4B = 4 MiB per f32 input block
MIN_BLOCK_ROWS = 1024    # never stream blocks smaller than 512 KiB (f32)
CHUNK_ROWS = 256         # in-kernel reduction chunk (128 KiB per f32 operand)


def _cdiv(a, b):
    return -(-a // b)


def _round_up(a, b):
    return _cdiv(a, b) * b


# ---------------------------------------------------------------------------
# Generation-aware hardware queries (best effort, conservative fallbacks)
# ---------------------------------------------------------------------------
def _tpu_vmem_capacity():
    try:
        cap = getattr(pltpu.get_tpu_info(), "vmem_capacity_bytes", None)
        if cap:
            return int(cap)
    except Exception:
        pass
    return 64 * 1024 * 1024   # v7x per-TC VMEM; conservative everywhere else


def _tensorcores_per_chip():
    # v5e / v6e expose a single TensorCore per chip; v7x has two.
    try:
        kind = jax.devices()[0].device_kind.lower()
    except Exception:
        return 1
    return 2 if ("v7" in kind or "7x" in kind) else 1


def _chunk_rows(block_rows):
    """Largest multiple of 8 <= CHUNK_ROWS that divides block_rows."""
    cand = min(CHUNK_ROWS, block_rows)
    cand -= cand % SUBLANES
    while cand > SUBLANES:
        if block_rows % cand == 0:
            return cand
        cand -= SUBLANES
    return SUBLANES


# ---------------------------------------------------------------------------
# Kernels
# ---------------------------------------------------------------------------
def _real_loss_kernel(x_ref, y_ref, out_ref, acc_ref, *, mode, eps, alpha, chunk):
    """Charbonnier / L1 / L2 elementwise loss folded into an (8,128) partial sum."""
    @pl.when(pl.program_id(1) == 0)
    def _():
        acc_ref[...] = jnp.zeros_like(acc_ref)

    def accumulate(c, carry):
        r0 = pl.multiple_of(c * chunk, SUBLANES)
        d = (x_ref[pl.ds(r0, chunk), :].astype(jnp.float32)
             - y_ref[pl.ds(r0, chunk), :].astype(jnp.float32))
        if mode == "L1":
            val = jnp.abs(d)
        elif alpha == 1.0:              # "L2" mode: no pow -> no exp/log on EUP
            val = d * d + eps
        else:                           # charbonnier (alpha = 0.45)
            val = jnp.power(d * d + eps, alpha)
        # Fold (chunk, 128) -> (8, 128) with pure VPU adds.
        acc_ref[...] += val.reshape(-1, SUBLANES, LANES).sum(axis=0)
        return carry

    nchunks = x_ref.shape[0] // chunk
    lax.fori_loop(0, nchunks, accumulate, 0)

    @pl.when(pl.program_id(1) == pl.num_programs(1) - 1)
    def _():
        out_ref[...] = acc_ref[...]


def _hdr_loss_kernel(x_ref, t_ref, out_ref, acc_ref, *, eps, chunk):
    """HDR loss on an interleaved (real, imag) lane layout.

    Each (even, odd) lane pair holds one complex element.  Per lane we emit
    err_lane^2 / (|in| + eps)^2 with the pair-shared denominator built from
    one-lane rolls and a parity select, so the two lanes of a pair sum to
    |err|^2 / (|in| + eps)^2.  Zero padding contributes exactly 0.
    """
    @pl.when(pl.program_id(1) == 0)
    def _():
        acc_ref[...] = jnp.zeros_like(acc_ref)

    # Hoisted (loop-invariant): real components sit in even lanes.
    lane = jax.lax.broadcasted_iota(jnp.int32, (chunk, LANES), 1)
    is_even = (lane & 1) == 0

    def accumulate(c, carry):
        r0 = pl.multiple_of(c * chunk, SUBLANES)
        xin = x_ref[pl.ds(r0, chunk), :].astype(jnp.float32)
        err = xin - t_ref[pl.ds(r0, chunk), :].astype(jnp.float32)
        err_sq = err * err
        in_sq = xin * xin
        # Partner lane's |component|^2: even lanes read lane+1, odd lanes lane-1.
        nxt = pltpu.roll(in_sq, LANES - 1, 1)   # lane i -> in_sq[i + 1]
        prv = pltpu.roll(in_sq, 1, 1)           # lane i -> in_sq[i - 1]
        mag = jnp.sqrt(in_sq + jnp.where(is_even, nxt, prv)) + eps
        val = err_sq * pl.reciprocal(mag * mag)   # exact EUP reciprocal + VPU muls
        acc_ref[...] += val.reshape(-1, SUBLANES, LANES).sum(axis=0)
        return carry

    nchunks = x_ref.shape[0] // chunk
    lax.fori_loop(0, nchunks, accumulate, 0)

    @pl.when(pl.program_id(1) == pl.num_programs(1) - 1)
    def _():
        out_ref[...] = acc_ref[...]


# ---------------------------------------------------------------------------
# Wrapper glue (geometry / slab construction / pallas_call)
# ---------------------------------------------------------------------------
def _choose_geometry(n, ncores_avail):
    """Plan the streamed reduction for a flat length-``n`` operand.

    Returns (n_main, rows, block_rows, ncores, pad):
      n_main     elements streamed through the Pallas kernel
      rows       rows of the lane-dense (rows, 128) slab handed to the kernel
      block_rows rows per grid step
      ncores     length of the leading ("core") grid axis
      pad        zeros appended to reach rows*128 (single-block case only)
    The remaining n - n_main elements (always < ncores blocks) are reduced in
    one fused XLA pass by the caller -- no whole-tensor pad/copy for ragged
    shapes.
    """
    rows_needed = max(_round_up(_cdiv(n, LANES), SUBLANES), SUBLANES)
    # Single block: whole tensor in one grid step (pad is at most 1023 elems).
    if rows_needed <= MAX_BLOCK_ROWS:
        return n, rows_needed, rows_needed, 1, rows_needed * LANES - n

    # Exact fit: largest block size in [MIN, MAX] rows dividing the natural
    # row count -> zero copies, zero tail.
    if n % LANES == 0:
        full_rows = n // LANES
        cand = MAX_BLOCK_ROWS
        while cand >= MIN_BLOCK_ROWS:
            if full_rows % cand == 0:
                blocks = full_rows // cand
                nc = ncores_avail if blocks % ncores_avail == 0 else 1
                return n, full_rows, cand, nc, 0
            cand -= SUBLANES

    # Ragged: stream the largest block-aligned prefix at maximal block size;
    # the small tail is reduced in plain XLA by the caller.
    block_elems = MAX_BLOCK_ROWS * LANES
    blocks = n // block_elems
    if ncores_avail > 1 and blocks >= ncores_avail:
        blocks -= blocks % ncores_avail
        nc = ncores_avail
    else:
        nc = 1
    return blocks * block_elems, blocks * MAX_BLOCK_ROWS, MAX_BLOCK_ROWS, nc, 0


def _as_rows(flat, n_main, rows, pad):
    """First ``n_main`` elements of ``flat`` as a lane-dense (rows, 128) slab."""
    main = flat if n_main == flat.shape[0] else flat[:n_main]
    if pad:
        main = jnp.pad(main, (0, pad))
    return main.reshape(rows, LANES)


def _reduction_call(kernel, inputs, rows, block_rows, ncores):
    blocks = rows // block_rows
    steps = blocks // ncores

    itemsize = max(jnp.dtype(a.dtype).itemsize for a in inputs)
    need = len(inputs) * 2 * block_rows * LANES * itemsize + (2 << 20)
    vmem_limit = max(min(max(need, 32 * 1024 * 1024),
                         (3 * _tpu_vmem_capacity()) // 4), need)

    if ncores > 1 and hasattr(pltpu, "CORE_PARALLEL") and hasattr(pltpu, "ARBITRARY"):
        # Real two-TensorCore split on v7x (plain "parallel" may not change
        # codegen); v5e/v6e always take the string path with ncores == 1.
        semantics = (pltpu.CORE_PARALLEL, pltpu.ARBITRARY)
    else:
        semantics = ("parallel", "arbitrary")

    in_spec = pl.BlockSpec((block_rows, LANES), lambda c, j: (c * steps + j, 0))
    out = pl.pallas_call(
        kernel,
        out_shape=jax.ShapeDtypeStruct((ncores * SUBLANES, LANES), jnp.float32),
        grid_spec=pltpu.PrefetchScalarGridSpec(
            num_scalar_prefetch=0,
            grid=(ncores, steps),
            in_specs=[in_spec] * len(inputs),
            out_specs=pl.BlockSpec((SUBLANES, LANES), lambda c, j: (c, 0)),
            scratch_shapes=[pltpu.VMEM((SUBLANES, LANES), jnp.float32)],
        ),
        compiler_params=pltpu.CompilerParams(
            dimension_semantics=semantics,
            vmem_limit_bytes=int(vmem_limit)),
    )(*inputs)
    # Tiny final reduce of (ncores*8, 128) partials in plain XLA.
    return jnp.sum(out, dtype=jnp.float32)


# ---------------------------------------------------------------------------
# Mode drivers
# ---------------------------------------------------------------------------
def _tail_real(xt, yt, mode, eps, alpha):
    d = xt.astype(jnp.float32) - yt.astype(jnp.float32)
    if mode == "L1":
        return jnp.sum(jnp.abs(d))
    if alpha == 1.0:
        return jnp.sum(d * d + eps)
    return jnp.sum(jnp.power(d * d + eps, alpha))


def _run_real(x, y, mode, eps, alpha):
    n = int(x.size)
    n_main, rows, block_rows, ncores, pad = _choose_geometry(
        n, _tensorcores_per_chip())
    xf = x.reshape(-1)
    yf = y.reshape(-1)
    kern = functools.partial(_real_loss_kernel, mode=mode, eps=eps, alpha=alpha,
                             chunk=_chunk_rows(block_rows))
    total = _reduction_call(kern,
                            (_as_rows(xf, n_main, rows, pad),
                             _as_rows(yf, n_main, rows, pad)),
                            rows, block_rows, ncores)
    if pad and mode != "L1":
        # Analytic correction: each zero-padded element contributed eps**alpha.
        total = total - pad * (float(eps) ** float(alpha))
    if n_main < n:
        # Ragged tail (< 2 blocks): one fused XLA pass, no extra copies.
        total = total + _tail_real(xf[n_main:], yf[n_main:], mode, eps, alpha)
    return total / n


def _interleaved(a):
    """Flatten to 1-D with (real, imag) interleaved in adjacent elements."""
    if jnp.iscomplexobj(a):
        # TODO(synk): complex-dtype HDR inputs need one repack copy; the float
        # (..., 2) layout that torch.view_as_complex expects is zero-copy.
        a = jnp.stack([jnp.real(a), jnp.imag(a)], axis=-1)
    assert a.shape[-1] == 2, "HDR expects trailing dim of size 2 (real, imag)"
    return a.reshape(-1)


def _tail_hdr(xt, yt, eps):
    xr = xt[0::2].astype(jnp.float32)
    xi = xt[1::2].astype(jnp.float32)
    er = xr - yt[0::2].astype(jnp.float32)
    ei = xi - yt[1::2].astype(jnp.float32)
    num = er * er + ei * ei
    mag = jnp.sqrt(xr * xr + xi * xi) + eps
    return jnp.sum(num / (mag * mag))


def _run_hdr(x, y, eps):
    xf = _interleaved(x)
    yf = _interleaved(y)
    n = int(xf.shape[0])               # interleaved length = 2 * n_complex
    n_main, rows, block_rows, ncores, pad = _choose_geometry(
        n, _tensorcores_per_chip())
    kern = functools.partial(_hdr_loss_kernel, eps=eps,
                             chunk=_chunk_rows(block_rows))
    total = _reduction_call(kern,
                            (_as_rows(xf, n_main, rows, pad),
                             _as_rows(yf, n_main, rows, pad)),
                            rows, block_rows, ncores)
    if n_main < n:
        total = total + _tail_hdr(xf[n_main:], yf[n_main:], eps)
    return total / (n // 2)            # mean over complex elements


class PhotometricLoss:
    """JAX/Pallas port of the PyTorch PhotometricLoss module (forward only)."""

    def __init__(self, mode):
        assert mode in ("charbonnier", "L1", "L2", "HDR")
        self.mode = mode

    def __call__(self, inputs, outputs):
        # TODO(synk): complex-dtype inputs to charbonnier/L1/L2 (conj(d)*d
        # path) are not supported; real-valued tensors only.
        if self.mode == "charbonnier":
            return _run_real(inputs, outputs, "charbonnier", 1e-06, 0.45)
        if self.mode == "L2":
            return _run_real(inputs, outputs, "charbonnier", 1e-06, 1.0)
        if self.mode == "L1":
            return _run_real(inputs, outputs, "L1", 0.0, 1.0)
        # HDR: complex dtype, or trailing dim of 2 = (real, imag) as
        # torch.view_as_complex expects.
        # TODO(synk): optional `weights` / `reduce=False` args of
        # HDRLoss.forward are not exposed (defaults weights=None, reduce=True).
        return _run_hdr(inputs, outputs, eps=0.001)


# ---------------------------------------------------------------------------
# Pure-JAX references for verification
# ---------------------------------------------------------------------------
def _ref_charbonnier(x, y, eps, alpha):
    d = x.astype(jnp.float32) - y.astype(jnp.float32)
    return jnp.mean(jnp.power(d * d + eps, alpha))


def _ref_l1(x, y):
    return jnp.mean(jnp.abs(x.astype(jnp.float32) - y.astype(jnp.float32)))


def _ref_hdr(x, y, eps):
    xi = x[..., 0] + 1j * x[..., 1]
    yi = y[..., 0] + 1j * y[..., 1]
    err = xi - yi
    loss = (jnp.abs(err) / (jnp.abs(xi) + eps)) ** 2
    return jnp.mean(loss).astype(jnp.float32)


if __name__ == "__main__":
    key = jax.random.PRNGKey(0)
    k1, k2, k3, k4 = jax.random.split(key, 4)

    # Real-valued inputs (NCHW): batch=2, channels=4, spatial=16.
    x = jax.random.normal(k1, (2, 4, 16, 16), dtype=jnp.float32)
    y = jax.random.normal(k2, (2, 4, 16, 16), dtype=jnp.float32)

    # Complex-pair inputs for HDR: trailing dim 2 = (real, imag).
    xc = jax.random.normal(k3, (2, 4, 16, 16, 2), dtype=jnp.float32)
    yc = jax.random.normal(k4, (2, 4, 16, 16, 2), dtype=jnp.float32)

    results = {
        "charbonnier": PhotometricLoss("charbonnier")(x, y),
        "L1": PhotometricLoss("L1")(x, y),
        "L2": PhotometricLoss("L2")(x, y),
        "HDR": PhotometricLoss("HDR")(xc, yc),
    }
    for v in results.values():
        jax.block_until_ready(v)

    refs = {
        "charbonnier": _ref_charbonnier(x, y, 1e-06, 0.45),
        "L1": _ref_l1(x, y),
        "L2": _ref_charbonnier(x, y, 1e-06, 1.0),
        "HDR": _ref_hdr(xc, yc, 0.001),
    }
    def _close(a, b):
        return abs(float(a) - float(b)) <= 1e-4 * (1.0 + abs(float(b)))
    for name in results:
        assert _close(results[name], refs[name]), (name, float(results[name]),
                                                   float(refs[name]))

    # Exercise the multi-block grid and ragged prefix+tail paths with the same
    # small data by temporarily shrinking the block-size window.
    _orig_blocks = (MAX_BLOCK_ROWS, MIN_BLOCK_ROWS)
    MAX_BLOCK_ROWS, MIN_BLOCK_ROWS = 8, 8
    try:
        multi = PhotometricLoss("charbonnier")(x, y)       # exact multi-block
        hdr_multi = PhotometricLoss("HDR")(xc, yc)         # multi-block HDR
        xr = jax.random.normal(k1, (3, 5, 7, 11), dtype=jnp.float32)
        yr = jax.random.normal(k2, (3, 5, 7, 11), dtype=jnp.float32)
        ragged = PhotometricLoss("L1")(xr, yr)             # prefix + XLA tail
        jax.block_until_ready((multi, hdr_multi, ragged))
        assert _close(multi, refs["charbonnier"])
        assert _close(hdr_multi, refs["HDR"])
        assert _close(ragged, _ref_l1(xr, yr))
    finally:
        MAX_BLOCK_ROWS, MIN_BLOCK_ROWS = _orig_blocks

    print("KERNEL_OK")
</pallas_src>

<mosaic_0001>
module attributes {stable_mosaic.version = 11 : i64} {
  func.func @_real_loss_kernel(%arg0: i32, %arg1: i32, %arg2: memref<16x128xf32, #tpu.memory_space<vmem>>, %arg3: memref<16x128xf32, #tpu.memory_space<vmem>>, %arg4: memref<8x128xf32, #tpu.memory_space<vmem>>, %arg5: memref<8x128xf32, #tpu.memory_space<vmem>>) attributes {dimension_semantics = [#tpu.dimension_semantics<parallel>, #tpu.dimension_semantics<arbitrary>], iteration_bounds = array<i64: 1, 1>, scalar_prefetch = 0 : i64, scratch_operands = 1 : i64, tpu.core_type = #tpu.core_type<tc>, window_params = [{transform_indices = @transform_0, window_bounds = array<i64: 16, 128>}, {transform_indices = @transform_1, window_bounds = array<i64: 16, 128>}, {transform_indices = @transform_2, window_bounds = array<i64: 8, 128>}]} {
    %c0_i32 = arith.constant 0 : i32
    %0 = arith.cmpi eq, %arg1, %c0_i32 : i32
    %1 = arith.extui %0 : i1 to i32
    %c0_i32_0 = arith.constant 0 : i32
    %2 = arith.cmpi ne, %1, %c0_i32_0 : i32
    scf.if %2 {
      %cst_11 = arith.constant 0.000000e+00 : f32
      %23 = vector.broadcast %cst_11 : f32 to vector<8x128xf32>
      %c0_12 = arith.constant 0 : index
      %c0_13 = arith.constant 0 : index
      %24 = vector.load %arg5[%c0_12, %c0_13] : memref<8x128xf32, #tpu.memory_space<vmem>>, vector<8x128xf32>
      tpu.vector_store %arg5[%c0_12, %c0_13], %23 {strides = array<i32>} : memref<8x128xf32, #tpu.memory_space<vmem>>, vector<8x128xf32>,
    } else {
    }
    %c0_i32_1 = arith.constant 0 : i32
    %c16_i32 = arith.constant 16 : i32
    %3 = arith.muli %c0_i32_1, %c16_i32 : i32
    %4 = tpu.assume_multiple %3, 8 : i32
    %5 = arith.index_cast %4 : i32 to index
    %c0 = arith.constant 0 : index
    %6 = vector.load %arg2[%5, %c0] : memref<16x128xf32, #tpu.memory_space<vmem>>, vector<16x128xf32>
    %7 = arith.index_cast %4 : i32 to index
    %c0_2 = arith.constant 0 : index
    %8 = vector.load %arg3[%7, %c0_2] : memref<16x128xf32, #tpu.memory_space<vmem>>, vector<16x128xf32>
    %9 = arith.subf %6, %8 : vector<16x128xf32>
    %10 = arith.mulf %9, %9 : vector<16x128xf32>
    %cst = arith.constant 9.99999997E-7 : f32
    %11 = vector.broadcast %cst : f32 to vector<16x128xf32>
    %12 = arith.addf %10, %11 : vector<16x128xf32>
    %cst_3 = arith.constant 4.500000e-01 : f32
    %13 = vector.broadcast %cst_3 : f32 to vector<16x128xf32>
    %14 = math.powf %12, %13 : vector<16x128xf32>
    %c0_4 = arith.constant 0 : index
    %c0_5 = arith.constant 0 : index
    %15 = vector.load %arg5[%c0_4, %c0_5] : memref<8x128xf32, #tpu.memory_space<vmem>>, vector<8x128xf32>
    %16 = vector.shape_cast %14 : vector<16x128xf32> to vector<2x8x128xf32>
    %cst_6 = arith.constant dense<0.000000e+00> : vector<8x128xf32>
    %17 = vector.multi_reduction <add>, %16, %cst_6 [0] : vector<2x8x128xf32> to vector<8x128xf32>
    %18 = arith.addf %15, %17 : vector<8x128xf32>
    %c0_7 = arith.constant 0 : index
    %c0_8 = arith.constant 0 : index
    %19 = vector.load %arg5[%c0_7, %c0_8] : memref<8x128xf32, #tpu.memory_space<vmem>>, vector<8x128xf32>
    tpu.vector_store %arg5[%c0_7, %c0_8], %18 {strides = array<i32>} : memref<8x128xf32, #tpu.memory_space<vmem>>, vector<8x128xf32>,
    %c1_i32 = arith.constant 1 : i32
    %c0_i32_9 = arith.constant 0 : i32
    %20 = arith.cmpi eq, %arg1, %c0_i32_9 : i32
    %21 = arith.extui %20 : i1 to i32
    %c0_i32_10 = arith.constant 0 : i32
    %22 = arith.cmpi ne, %21, %c0_i32_10 : i32
    scf.if %22 {
      %c0_11 = arith.constant 0 : index
      %c0_12 = arith.constant 0 : index
      %23 = vector.load %arg5[%c0_11, %c0_12] : memref<8x128xf32, #tpu.memory_space<vmem>>, vector<8x128xf32>
      %c0_13 = arith.constant 0 : index
      %c0_14 = arith.constant 0 : index
      %24 = vector.load %arg4[%c0_13, %c0_14] : memref<8x128xf32, #tpu.memory_space<vmem>>, vector<8x128xf32>
      tpu.vector_store %arg4[%c0_13, %c0_14], %23 {strides = array<i32>} : memref<8x128xf32, #tpu.memory_space<vmem>>, vector<8x128xf32>,
    } else {
    }
    return
  }
  func.func @transform_0(%arg0: i32, %arg1: i32) -> (i32, i32) {
    %c1_i32 = arith.constant 1 : i32
    %0 = arith.muli %arg0, %c1_i32 : i32
    %1 = arith.addi %0, %arg1 : i32
    %c0_i32 = arith.constant 0 : i32
    %c0_i32_0 = arith.constant 0 : i32
    return %1, %c0_i32 : i32, i32
  }
  func.func @transform_1(%arg0: i32, %arg1: i32) -> (i32, i32) {
    %c1_i32 = arith.constant 1 : i32
    %0 = arith.muli %arg0, %c1_i32 : i32
    %1 = arith.addi %0, %arg1 : i32
    %c0_i32 = arith.constant 0 : i32
    %c0_i32_0 = arith.constant 0 : i32
    return %1, %c0_i32 : i32, i32
  }
  func.func @transform_2(%arg0: i32, %arg1: i32) -> (i32, i32) {
    %c0_i32 = arith.constant 0 : i32
    %c0_i32_0 = arith.constant 0 : i32
    return %arg0, %c0_i32 : i32, i32
  }
}

</mosaic_0001>

<bundles_post_ra>
// kernel: tpu_custom_call.1
= control target key start
LH: loop header
LB: loop body
LE: loop exit
PB: predicated region body
PF: predicated region fallthrough
CT: control target
= control target key end

     0   :  { %7 = vsyncpa [#allocation4], 0  ;;  %s287_s0 = inlined_call_operand.hbm [shape: f32[16,128], index: 0, kind: input, shape index: {}]   ;;  %s288_s1 = inlined_call_operand.hbm [shape: f32[16,128], index: 1, kind: input, shape index: {}]   ;;  %s289_s2 = inlined_call_operand.hbm [shape: f32[8,128], index: 2, kind: output, shape index: {}]  }
   0x1   :  { %8 = vsyncpa [#allocation7], 0 }
   0x2   :  { %9 = vsyncpa [#allocation5], 0  ;;  %s231_s9 = smov [#allocation3]   ;;  %s159_s13 = scalar_lea.hbm %s287_s0, 256 }
   0x3   :  { %s19_s10 = sshll.u32 %s231_s9, 4  ;;  %p160_p0 = scmp.ne.s32.totalorder %s287_s0, %s159_s13  ;;  %s20_s10 = int_to_ptr.vmem [resolvable:$true] %s19_s10 }
   0x4   :  { %p163_p1 = scmp.lt.u32.totalorder %s159_s13, %s287_s0 }
   0x6   :  { %p165_p2 = pnand %p163_p1, %p160_p0 }
   0x8   :  { %168 = shalt.err (!%p165_p2)
}
   0x9   :  { %s169_s18 = scalar_lea.vmem %s20_s10, 256  ;;  %p174_p4 = scmp.lt.s32.totalorder %s20_s10, %s20_s10 }
   0xa   :  { %p170_p3 = scmp.ne.s32.totalorder %s20_s10, %s169_s18  ;;  %p175_p5 = scmp.lt.s32.totalorder %s169_s18, %s169_s18 }
   0xc   :  { %p176_p6 = por %p175_p5, %p174_p4 }
   0xe   :  { %p177_p7 = pnand %p176_p6, %p170_p3 }
  0x10   :  { %180 = shalt.err (!%p177_p7)
}
  0x11   :  { %s232_s19 = smov 128   ;;  %s233_s20 = smov 8  }
  0x12   :  { %25 = dma.hbm_to_vmem [thread:$0]  %s287_s0, 256, %s20_s10, [#allocation4], %s232_s19, %s232_s19, %s233_s20  }
  0x13   :  { %s234_s23 = smov [#allocation6]   ;;  %s181_s27 = scalar_lea.hbm %s288_s1, 256 }
  0x14   :  { %s35_s24 = sshll.u32 %s234_s23, 4  ;;  %p182_p8 = scmp.ne.s32.totalorder %s288_s1, %s181_s27  ;;  %s36_s24 = int_to_ptr.vmem [resolvable:$true] %s35_s24 }
  0x15   :  { %p185_p9 = scmp.lt.u32.totalorder %s181_s27, %s288_s1 }
  0x17   :  { %p187_p10 = pnand %p185_p9, %p182_p8 }
  0x19   :  { %190 = shalt.err (!%p187_p10)
}
  0x1a   :  { %s191_s4 = scalar_lea.vmem %s36_s24, 256  ;;  %p196_p12 = scmp.lt.s32.totalorder %s36_s24, %s36_s24 }
  0x1b   :  { %p192_p11 = scmp.ne.s32.totalorder %s36_s24, %s191_s4  ;;  %p197_p13 = scmp.lt.s32.totalorder %s191_s4, %s191_s4 }
  0x1d   :  { %p198_p0 = por %p197_p13, %p196_p12 }
  0x1f   :  { %p199_p1 = pnand %p198_p0, %p192_p11 }
  0x21   :  { %202 = shalt.err (!%p199_p1)
}
  0x22   :  { %41 = dma.hbm_to_vmem [thread:$0]  %s288_s1, 256, %s36_s24, [#allocation7], %s232_s19, %s232_s19, %s233_s20  }
  0x23   :  { %225 = dma.done.wait [#allocation4], 256  }
  0x24   :  { %226 = vsyncadd [#allocation4], 4294967040 }
  0x25   :  { %227 = dma.done.wait [#allocation7], 256  }
  0x26   :  { %228 = vsyncadd [#allocation7], 4294967040  ;;  %v57_v0 = vld [vmem:[#allocation3] sm:$0xff]  ;;  %v58_v1 = vld [vmem:[#allocation3 + $0x8] sm:$0xff]  ;;  %s235_s1 = smov [#allocation8]  }
  0x27   :  { %v59_v2 = vld [vmem:[#allocation6] sm:$0xff]  ;;  %v60_v3 = vld [vmem:[#allocation6 + $0x8] sm:$0xff]  ;;  %s84_s6 = sshll.u32 %s235_s1, 4  ;;  %s85_s6 = int_to_ptr.vmem [resolvable:$true] %s84_s6 }
  0x28   :  { %v61_v4 = vsub.f32 %v57_v0, %v59_v2  ;;  %v62_v5 = vsub.f32 %v58_v1, %v60_v3  ;;  %s203_s7 = scalar_lea.vmem %s85_s6, 128  ;;  %p208_p3 = scmp.lt.s32.totalorder %s85_s6, %s85_s6 }
  0x29   :  { %p204_p2 = scmp.ne.s32.totalorder %s85_s6, %s203_s7  ;;  %p209_p4 = scmp.lt.s32.totalorder %s203_s7, %s203_s7 }
  0x2a   :  { %v63_v6 = vmul.f32 %v61_v4, %v61_v4  ;;  %v64_v7 = vmul.f32 %v62_v5, %v62_v5 }
  0x2b   :  { %p210_p5 = por %p209_p4, %p208_p3 }
  0x2c   :  { %v65_v8 = vadd.f32 1e-06, %v63_v6  ;;  %v66_v9 = vadd.f32 1e-06, %v64_v7 }
  0x2d   :  { %p211_p6 = pnand %p210_p5, %p204_p2 }
  0x2e   :  { %v98_v10 = vand.u32 2147483647, %v65_v8  ;;  %v124_v11 = vand.u32 2147483647, %v66_v9  ;;  %vm102_vm0 = vcmp.lt.f32.partialorder %v65_v8, 0  ;;  %vm103_vm1 = vcmp.eq.f32.partialorder %v65_v8, 0 }
  0x2f   :  { %vm128_vm2 = vcmp.lt.f32.partialorder %v66_v9, 0  ;;  %vm129_vm4 = vcmp.eq.f32.partialorder %v66_v9, 0  ;;  %vm115_vm5 = vcmp.ne.f32.partialorder %v65_v8, %v65_v8  ;;  %vm104_vm7 = vcmp.eq.f32.partialorder %v65_v8, 1065353216 }
  0x30   :  { %151 = vlog2.f32 %v98_v10  ;;  %vm107_vm3 = vcmp.eq.f32.partialorder %v98_v10, 2139095040  ;;  %vm133_vm6 = vcmp.eq.f32.partialorder %v124_v11, 2139095040  ;;  %vm141_vm8 = vcmp.ne.f32.partialorder %v66_v9, %v66_v9 }
  0x31   :  { %153 = vlog2.f32 %v124_v11  ;;  %vm130_vm9 = vcmp.eq.f32.partialorder %v66_v9, 1065353216 }
  0x3a   :  { %v152_v12 = vpop.eup %151 }
  0x3b   :  { %v154_v13 = vpop.eup %153  ;;  %v100_v14 = vmul.f32 0.45, %v152_v12 }
  0x3c   :  { %v126_v15 = vmul.f32 0.45, %v154_v13 }
  0x3d   :  { %155 = vpow2.f32 %v100_v14 }
  0x3e   :  { %157 = vpow2.f32 %v126_v15 }
  0x47   :  { %v156_v16 = vpop.eup %155 }
  0x48   :  { %v158_v17 = vpop.eup %157  ;;  %v108_v18 = vsel %vm102_vm0, 2143289344, %v156_v16 }
  0x49   :  { %v109_v19 = vsel %vm103_vm1, 0, %v108_v18  ;;  %v134_v20 = vsel %vm128_vm2, 2143289344, %v158_v17 }
  0x4a   :  { %v114_v21 = vsel %vm107_vm3, 2139095040, %v109_v19  ;;  %v135_v22 = vsel %vm129_vm4, 0, %v134_v20 }
  0x4b   :  { %v118_v23 = vsel %vm115_vm5, 2143289344, %v114_v21  ;;  %v140_v24 = vsel %vm133_vm6, 2139095040, %v135_v22 }
  0x4c   :  { %v119_v25 = vsel %vm104_vm7, 1065353216, %v118_v23  ;;  %v144_v26 = vsel %vm141_vm8, 2143289344, %v140_v24 }
  0x4d   :  { %v145_v27 = vsel %vm130_vm9, 1065353216, %v144_v26 }
  0x4e   :  { %v70_v28 = vadd.f32 %v145_v27, %v119_v25 }
  0x50   :  { %77 = vst [vmem:[#allocation8] sm:$0xff] %v70_v28 }
  0x51   :  { %214 = shalt.err (!%p211_p6)
}
  0x52   :  { %s215_s10 = scalar_lea.hbm %s289_s2, 128 }
  0x53   :  { %p216_p7 = scmp.ne.s32.totalorder %s289_s2, %s215_s10  ;;  %p219_p8 = scmp.lt.u32.totalorder %s215_s10, %s289_s2 }
  0x55   :  { %p221_p9 = pnand %p219_p8, %p216_p7 }
  0x57   :  { %224 = shalt.err (!%p221_p9)
}
  0x58   :  { %87 = dma.vmem_to_hbm [thread:$0]  %s85_s6, 128, %s289_s2, [#allocation5]  }
  0x59   :  { %229 = dma.done.wait [#allocation5], 128  }
  0x5a   :  { %230 = vsyncadd [#allocation5], 4294967168 }
  0x5b   :  { %91 = vsyncpa [#allocation4], 1 }
  0x5c   :  { %92 = vsyncpa [#allocation7], 1 }
  0x5d   :  { %93 = vsyncpa [#allocation5], 1 }

</bundles_post_ra>
